<compile_context>
chip_gen: v6e
topology: v6e:2x2x1
jax: 0.10.0
libtpu: 0.0.40
codegen_flags: <defaults>
</compile_context>

<pallas_src>
import functools

import numpy as np
import jax
import jax.numpy as jnp
from jax.experimental import pallas as pl
from jax.experimental.pallas import tpu as pltpu


def _round_up(n, m):
    return ((n + m - 1) // m) * m


def _vmem_capacity_bytes():
    try:
        return int(pltpu.get_tpu_info().vmem_capacity_bytes)
    except Exception:
        return 128 * 1024 * 1024  # v5e / v6e default


# ----------------------------------------------------------------------------
# Kernel: per-tile partial sum of  sum_c( -softmax(t/T) * log_softmax(p/T) )
#         == sum_rows( logsumexp(x) - sum_c(e_y * x) / sum_c(e_y) )
# ----------------------------------------------------------------------------
def _kd_partial_kernel(pred_ref, teach_ref, out_ref, *, inv_temp, block_rows,
                       n_valid_rows):
    x = pred_ref[...].astype(jnp.float32) * inv_temp    # (TB, C) student / T
    y = teach_ref[...].astype(jnp.float32) * inv_temp   # (TB, C) teacher / T

    # logsumexp(x) along the class (lane) axis.
    x_max = jnp.max(x, axis=-1, keepdims=True)
    lse_x = x_max + jnp.log(jnp.sum(jnp.exp(x - x_max), axis=-1, keepdims=True))

    # sum(softmax(y) * x) without materializing a normalized softmax.
    y_max = jnp.max(y, axis=-1, keepdims=True)
    e_y = jnp.exp(y - y_max)
    s_y = jnp.sum(e_y, axis=-1, keepdims=True)           # (TB, 1), >= 1
    xw = jnp.sum(e_y * x, axis=-1, keepdims=True)        # (TB, 1)

    row_loss = lse_x - xw / s_y                           # (TB, 1)

    # Mask zero-padded batch rows out of the tile partial sum.
    row0 = pl.program_id(0) * block_rows
    rid = row0 + jax.lax.broadcasted_iota(jnp.int32, row_loss.shape, 0)
    masked = jnp.where(rid < n_valid_rows, row_loss, 0.0)

    partial = jnp.sum(masked, keepdims=True)              # (1, 1)
    out_ref[...] = jnp.broadcast_to(partial, out_ref.shape)


# ----------------------------------------------------------------------------
# Wrapper
# ----------------------------------------------------------------------------
def _choose_block_rows(n_rows, n_classes, target_f32_block_bytes, row_align):
    """Row tile (multiple of row_align) sized from the f32-equivalent bytes."""
    rows_a = _round_up(max(n_rows, 1), row_align)
    f32_row_bytes = 4 * max(1, n_classes)
    tb = (target_f32_block_bytes // f32_row_bytes) // row_align * row_align
    tb = max(row_align, tb)
    # Keep enough grid steps to overlap the double-buffered DMAs and, on v7x,
    # to feed both TensorCores; tiny inputs stay a single tile.
    if rows_a >= 4 * row_align:
        tb = min(tb, max(row_align, (rows_a // 4) // row_align * row_align))
    elif rows_a >= 2 * row_align:
        tb = min(tb, max(row_align, (rows_a // 2) // row_align * row_align))
    return min(tb, rows_a)


def kd_soft_ce_loss(pred, teacher_outputs, temperature, *, block_rows=None):
    """mean over rows of sum_c( -softmax(t/T) * log_softmax(p/T) ), classes = dim 1."""
    if pred.shape != teacher_outputs.shape:
        raise ValueError("pred / teacher_outputs shape mismatch")

    # Reference softmaxes over dim=1 and means over everything else; fold any
    # trailing (spatial) dims into the row axis with the class axis last.
    if pred.ndim == 2:
        p2, t2 = pred, teacher_outputs
    else:
        # TODO(synk): this transpose+reshape makes XLA write and re-read both
        # tensors in HBM before the kernel runs; a fused (batch, spatial) grid
        # with an in-kernel class-axis reduction would avoid that round trip.
        perm = (0,) + tuple(range(2, pred.ndim)) + (1,)
        p2 = jnp.transpose(pred, perm).reshape(-1, pred.shape[1])
        t2 = jnp.transpose(teacher_outputs, perm).reshape(-1, teacher_outputs.shape[1])

    n_rows, n_classes = p2.shape
    itemsize = jnp.dtype(p2.dtype).itemsize
    row_align = 8 * max(1, 4 // itemsize)      # f32: 8, bf16: 16, int8/fp8: 32

    cap = _vmem_capacity_bytes()
    # Per-input-block target in f32-equivalent bytes (budgets the upcast).
    target_f32_block = (3 << 20) if cap <= (64 << 20) else (6 << 20)

    if block_rows is None:
        tb = _choose_block_rows(n_rows, n_classes, target_f32_block, row_align)
    else:
        tb = max(row_align, (int(block_rows) // row_align) * row_align)
        tb = min(tb, _round_up(n_rows, row_align))

    rows_p = _round_up(n_rows, tb)
    if rows_p != n_rows:
        # Pad with zero rows; they are masked out of the partial sums in-kernel.
        p2 = jnp.pad(p2, ((0, rows_p - n_rows), (0, 0)))
        t2 = jnp.pad(t2, ((0, rows_p - n_rows), (0, 0)))
    num_tiles = rows_p // tb

    # VMEM budget: 2 inputs x 2 pipeline buffers (native dtype) + ~4 live
    # (TB, C) f32 intermediates + the tiny output blocks, with 1.5x headroom,
    # capped at 3/4 of physical VMEM (64 MiB on v7x, 128 MiB on v5e/v6e).
    in_block = tb * n_classes * itemsize
    f32_block = tb * n_classes * 4
    need = 2 * 2 * in_block + 4 * f32_block + 2 * 8 * 128 * 4
    vmem_limit = int(min(max(need * 3 // 2, 32 << 20), (cap * 3) // 4))

    kernel = functools.partial(
        _kd_partial_kernel,
        inv_temp=1.0 / float(temperature),
        block_rows=tb,
        n_valid_rows=n_rows,
    )

    out = pl.pallas_call(
        kernel,
        out_shape=jax.ShapeDtypeStruct((num_tiles * 8, 128), jnp.float32),
        grid=(num_tiles,),
        in_specs=[
            pl.BlockSpec((tb, n_classes), lambda i: (i, 0)),
            pl.BlockSpec((tb, n_classes), lambda i: (i, 0)),
        ],
        out_specs=pl.BlockSpec((8, 128), lambda i: (i, 0)),
        compiler_params=pltpu.CompilerParams(
            dimension_semantics=("parallel",),
            vmem_limit_bytes=vmem_limit,
        ),
    )(p2, t2)

    # Each tile broadcast its partial sum across its (8, 128) block; read one
    # scalar per tile (tiny) and finish the mean in plain JAX.
    partials = out[::8, 0]                      # (num_tiles,)
    return jnp.sum(partials) / jnp.float32(n_rows)


class FairWithoutDemoPallas:
    """Pallas port of FairWithoutDemo.forward (soft-target distillation loss)."""

    def __init__(self, config=None, temperature=None):
        if temperature is not None:
            self.T = float(temperature)
        else:
            self.T = float(getattr(config, "temperature", config))

    def __call__(self, pred, teacher_outputs):
        return kd_soft_ce_loss(pred, teacher_outputs, self.T)


# ----------------------------------------------------------------------------
# Pure-JAX reference (mirrors the PyTorch module)
# ----------------------------------------------------------------------------
def _forward_ref(pred, teacher_outputs, T):
    p = pred.astype(jnp.float32) / T
    t = teacher_outputs.astype(jnp.float32) / T
    log_p = jax.nn.log_softmax(p, axis=1)
    p_t = jax.nn.softmax(t, axis=1)
    return jnp.mean(jnp.sum(-p_t * log_p, axis=1))


if __name__ == "__main__":
    key = jax.random.PRNGKey(0)
    T = 4.0

    cases = [
        # (shape, dtype, forced block_rows)
        ((8, 32), jnp.float32, None),      # single tile
        ((10, 64), jnp.float32, None),     # batch-padding + in-kernel masking
        ((64, 256), jnp.bfloat16, 16),     # multi-tile pipeline, bf16 inputs
        ((2, 5, 4, 4), jnp.float32, None), # >2-D logits (softmax over dim=1)
    ]

    for idx, (shape, dt, br) in enumerate(cases):
        k0, k1 = jax.random.split(jax.random.fold_in(key, idx))
        pred = jax.random.normal(k0, shape, jnp.float32).astype(dt)
        teach = jax.random.normal(k1, shape, jnp.float32).astype(dt)
        got = jax.block_until_ready(kd_soft_ce_loss(pred, teach, T, block_rows=br))
        ref = jax.block_until_ready(_forward_ref(pred, teach, T))
        if not np.allclose(np.asarray(got), np.asarray(ref), rtol=1e-4, atol=1e-5):
            raise AssertionError(f"case {idx}: pallas={got} ref={ref}")

    # Module-style call (interface parity with the PyTorch nn.Module).
    k0, k1 = jax.random.split(jax.random.fold_in(key, 99))
    pred = jax.random.normal(k0, (8, 32), jnp.float32)
    teach = jax.random.normal(k1, (8, 32), jnp.float32)
    mod = FairWithoutDemoPallas(temperature=T)
    loss = jax.block_until_ready(mod(pred, teach))
    ref = jax.block_until_ready(_forward_ref(pred, teach, T))
    if not np.allclose(np.asarray(loss), np.asarray(ref), rtol=1e-4, atol=1e-5):
        raise AssertionError(f"module call: pallas={loss} ref={ref}")

    print("KERNEL_OK")
</pallas_src>

<mosaic_0001>
module attributes {stable_mosaic.version = 11 : i64} {
  func.func @_kd_partial_kernel(%arg0: i32, %arg1: memref<8x32xf32, #tpu.memory_space<vmem>>, %arg2: memref<8x32xf32, #tpu.memory_space<vmem>>, %arg3: memref<8x128xf32, #tpu.memory_space<vmem>>) attributes {dimension_semantics = [#tpu.dimension_semantics<parallel>], iteration_bounds = array<i64: 1>, scalar_prefetch = 0 : i64, scratch_operands = 0 : i64, tpu.core_type = #tpu.core_type<tc>, window_params = [{transform_indices = @transform_0, window_bounds = array<i64: 8, 32>}, {transform_indices = @transform_1, window_bounds = array<i64: 8, 32>}, {transform_indices = @transform_2, window_bounds = array<i64: 8, 128>}]} {
    %c0 = arith.constant 0 : index
    %c0_0 = arith.constant 0 : index
    %0 = vector.load %arg1[%c0, %c0_0] : memref<8x32xf32, #tpu.memory_space<vmem>>, vector<8x32xf32>
    %cst = arith.constant 2.500000e-01 : f32
    %1 = vector.broadcast %cst : f32 to vector<8x32xf32>
    %2 = arith.mulf %0, %1 : vector<8x32xf32>
    %c0_1 = arith.constant 0 : index
    %c0_2 = arith.constant 0 : index
    %3 = vector.load %arg2[%c0_1, %c0_2] : memref<8x32xf32, #tpu.memory_space<vmem>>, vector<8x32xf32>
    %cst_3 = arith.constant 2.500000e-01 : f32
    %4 = vector.broadcast %cst_3 : f32 to vector<8x32xf32>
    %5 = arith.mulf %3, %4 : vector<8x32xf32>
    %cst_4 = arith.constant dense<0xFF800000> : vector<8xf32>
    %6 = vector.multi_reduction <maximumf>, %2, %cst_4 [1] : vector<8x32xf32> to vector<8xf32>
    %7 = vector.shape_cast %6 : vector<8xf32> to vector<8x1xf32>
    %8 = vector.broadcast %7 : vector<8x1xf32> to vector<8x32xf32>
    %9 = arith.subf %2, %8 : vector<8x32xf32>
    %10 = math.exp %9 : vector<8x32xf32>
    %cst_5 = arith.constant dense<0.000000e+00> : vector<8xf32>
    %11 = vector.multi_reduction <add>, %10, %cst_5 [1] : vector<8x32xf32> to vector<8xf32>
    %12 = vector.shape_cast %11 : vector<8xf32> to vector<8x1xf32>
    %13 = math.log %12 : vector<8x1xf32>
    %14 = arith.addf %7, %13 : vector<8x1xf32>
    %cst_6 = arith.constant dense<0xFF800000> : vector<8xf32>
    %15 = vector.multi_reduction <maximumf>, %5, %cst_6 [1] : vector<8x32xf32> to vector<8xf32>
    %16 = vector.shape_cast %15 : vector<8xf32> to vector<8x1xf32>
    %17 = vector.broadcast %16 : vector<8x1xf32> to vector<8x32xf32>
    %18 = arith.subf %5, %17 : vector<8x32xf32>
    %19 = math.exp %18 : vector<8x32xf32>
    %cst_7 = arith.constant dense<0.000000e+00> : vector<8xf32>
    %20 = vector.multi_reduction <add>, %19, %cst_7 [1] : vector<8x32xf32> to vector<8xf32>
    %21 = vector.shape_cast %20 : vector<8xf32> to vector<8x1xf32>
    %22 = arith.mulf %19, %2 : vector<8x32xf32>
    %cst_8 = arith.constant dense<0.000000e+00> : vector<8xf32>
    %23 = vector.multi_reduction <add>, %22, %cst_8 [1] : vector<8x32xf32> to vector<8xf32>
    %24 = vector.shape_cast %23 : vector<8xf32> to vector<8x1xf32>
    %25 = arith.divf %24, %21 : vector<8x1xf32>
    %26 = arith.subf %14, %25 : vector<8x1xf32>
    %c8_i32 = arith.constant 8 : i32
    %27 = arith.muli %arg0, %c8_i32 : i32
    %28 = tpu.iota {dimensions = array<i32: 0>} : vector<8x1xi32>
    %29 = vector.broadcast %27 : i32 to vector<8x1xi32>
    %30 = arith.addi %29, %28 : vector<8x1xi32>
    %c8_i32_9 = arith.constant 8 : i32
    %31 = vector.broadcast %c8_i32_9 : i32 to vector<8x1xi32>
    %32 = arith.cmpi slt, %30, %31 : vector<8x1xi32>
    %cst_10 = arith.constant 0.000000e+00 : f32
    %33 = vector.broadcast %cst_10 : f32 to vector<8x1xf32>
    %34 = arith.select %32, %26, %33 : vector<8x1xi1>, vector<8x1xf32>
    %35 = vector.shape_cast %34 : vector<8x1xf32> to vector<1x8x1xf32>
    %cst_11 = arith.constant dense<0.000000e+00> : vector<1xf32>
    %36 = vector.multi_reduction <add>, %35, %cst_11 [1, 2] : vector<1x8x1xf32> to vector<1xf32>
    %37 = vector.shape_cast %36 : vector<1xf32> to vector<1x1x1xf32>
    %38 = vector.extract %37[0, 0, 0] : f32 from vector<1x1x1xf32>
    %39 = vector.broadcast %38 : f32 to vector<1x1xf32>
    %40 = vector.shape_cast %39 : vector<1x1xf32> to vector<1x1xf32>
    %41 = vector.broadcast %40 : vector<1x1xf32> to vector<8x128xf32>
    %c0_12 = arith.constant 0 : index
    %c0_13 = arith.constant 0 : index
    %42 = vector.load %arg3[%c0_12, %c0_13] : memref<8x128xf32, #tpu.memory_space<vmem>>, vector<8x128xf32>
    tpu.vector_store %arg3[%c0_12, %c0_13], %41 {strides = array<i32>} : memref<8x128xf32, #tpu.memory_space<vmem>>, vector<8x128xf32>,
    return
  }
  func.func @transform_0(%arg0: i32) -> (i32, i32) {
    %c0_i32 = arith.constant 0 : i32
    %c0_i32_0 = arith.constant 0 : i32
    return %arg0, %c0_i32 : i32, i32
  }
  func.func @transform_1(%arg0: i32) -> (i32, i32) {
    %c0_i32 = arith.constant 0 : i32
    %c0_i32_0 = arith.constant 0 : i32
    return %arg0, %c0_i32 : i32, i32
  }
  func.func @transform_2(%arg0: i32) -> (i32, i32) {
    %c0_i32 = arith.constant 0 : i32
    %c0_i32_0 = arith.constant 0 : i32
    return %arg0, %c0_i32 : i32, i32
  }
}

</mosaic_0001>

<bundles_post_ra>
// kernel: tpu_custom_call.1
= control target key start
LH: loop header
LB: loop body
LE: loop exit
PB: predicated region body
PF: predicated region fallthrough
CT: control target
= control target key end

     0   :  { %7 = vsyncpa [#allocation3], 0  ;;  %s216_s0 = inlined_call_operand.hbm [shape: f32[8,32], index: 0, kind: input, shape index: {}]   ;;  %s217_s1 = inlined_call_operand.hbm [shape: f32[8,32], index: 1, kind: input, shape index: {}]   ;;  %s218_s2 = inlined_call_operand.hbm [shape: f32[8,128], index: 2, kind: output, shape index: {}]  }
   0x1   :  { %8 = vsyncpa [#allocation6], 0 }
   0x2   :  { %9 = vsyncpa [#allocation4], 0  ;;  %s184_s9 = smov [#allocation2]   ;;  %s185_s11 = smov [#allocation5]  }
   0x3   :  { %s16_s10 = sshll.u32 %s184_s9, 4  ;;  %s26_s12 = sshll.u32 %s185_s11, 4  ;;  %s17_s10 = int_to_ptr.vmem [resolvable:$true] %s16_s10  ;;  %s27_s12 = int_to_ptr.vmem [resolvable:$true] %s26_s12 }
   0x4   :  { %s126_s13 = scalar_lea.vmem %s17_s10, 128  ;;  %p131_p1 = scmp.lt.s32.totalorder %s17_s10, %s17_s10 }
   0x5   :  { %p127_p0 = scmp.ne.s32.totalorder %s17_s10, %s126_s13  ;;  %p132_p2 = scmp.lt.s32.totalorder %s126_s13, %s126_s13 }
   0x7   :  { %p133_p3 = por %p132_p2, %p131_p1 }
   0x9   :  { %p134_p4 = pnand %p133_p3, %p127_p0 }
   0xb   :  { %137 = shalt.err (!%p134_p4)
}
   0xc   :  { %19 = dma.hbm_to_vmem [thread:$0]  %s216_s0, 128, %s17_s10, [#allocation3]  }
   0xd   :  { %s146_s16 = scalar_lea.vmem %s27_s12, 128  ;;  %p151_p6 = scmp.lt.s32.totalorder %s27_s12, %s27_s12 }
   0xe   :  { %p147_p5 = scmp.ne.s32.totalorder %s27_s12, %s146_s16  ;;  %p152_p7 = scmp.lt.s32.totalorder %s146_s16, %s146_s16 }
  0x10   :  { %p153_p8 = por %p152_p7, %p151_p6 }
  0x12   :  { %p154_p9 = pnand %p153_p8, %p147_p5 }
  0x14   :  { %157 = shalt.err (!%p154_p9)
}
  0x15   :  { %29 = dma.hbm_to_vmem [thread:$0]  %s217_s1, 128, %s27_s12, [#allocation6]  }
  0x16   :  { %178 = dma.done.wait [#allocation3], 128  }
  0x17   :  { %179 = vsyncadd [#allocation3], 4294967168 }
  0x18   :  { %180 = dma.done.wait [#allocation6], 128  }
  0x19   :  { %181 = vsyncadd [#allocation6], 4294967168  ;;  %v36_v0 = vld [vmem:[#allocation2] sm:$0xff]  ;;  %vm40_vm0 = vcmask 261120   ;;  %v38_v1 = vld [vmem:[#allocation5] sm:$0xff]  ;;  %vm76_vm1 = vcmask 7168  }
  0x1a   :  { %v37_v2 = vmul.f32 0.25, %v36_v0  ;;  %v39_v3 = vmul.f32 0.25, %v38_v1  ;;  %s186_s0 = smov [#allocation7]  }
  0x1b   :  { %s95_s1 = sshll.u32 %s186_s0, 4  ;;  %s96_s1 = int_to_ptr.vmem [resolvable:$true] %s95_s1 }
  0x1c   :  { %v41_v4 = vsel %vm40_vm0, %v37_v2, -inf  ;;  %v53_v5 = vsel %vm40_vm0, %v39_v3, -inf  ;;  %s158_s20 = scalar_lea.vmem %s96_s1, 128  ;;  %p163_p11 = scmp.lt.s32.totalorder %s96_s1, %s96_s1 }
  0x1d   :  { %42 = vmax.xlane.f32.xlu0 %v41_v4  ;;  %p159_p10 = scmp.ne.s32.totalorder %s96_s1, %s158_s20  ;;  %p164_p12 = scmp.lt.s32.totalorder %s158_s20, %s158_s20 }
  0x1f   :  { %p165_p13 = por %p164_p12, %p163_p11 }
  0x21   :  { %54 = vmax.xlane.f32.xlu0 %v53_v5  ;;  %p166_p0 = pnand %p165_p13, %p159_p10 }
  0xa6   :  { %v43_v6 = vpop.xlane.xlu0 %42 }
  0xa7   :  { %v44_v7 = vsub.f32 %v37_v2, %v43_v6 }
  0xa9   :  { %v45_v8 = vmul.f32 1.442695, %v44_v7 }
  0xaa   :  { %v55_v9 = vpop.xlane.xlu0 %54 }
  0xab   :  { %110 = vpow2.f32 %v45_v8  ;;  %v56_v10 = vsub.f32 %v39_v3, %v55_v9 }
  0xad   :  { %v57_v11 = vmul.f32 1.442695, %v56_v10 }
  0xaf   :  { %112 = vpow2.f32 %v57_v11 }
  0xb8   :  { %v111_v12 = vpop.eup %110 }
  0xb9   :  { %v47_v13 = vsel %vm40_vm0, %v111_v12, 0.0 }
  0xba   :  { %48 = vadd.xlane.f32.xlu1 %v47_v13 }
  0xbc   :  { %v113_v14 = vpop.eup %112 }
  0xbd   :  { %v59_v15 = vsel %vm40_vm0, %v113_v14, 0.0  ;;  %v62_v16 = vmul.f32 %v113_v14, %v37_v2 }
  0xbe   :  { %60 = vadd.xlane.f32.xlu1 %v59_v15 }
  0xbf   :  { %v63_v17 = vsel %vm40_vm0, %v62_v16, 0.0 }
  0xc0   :  { %64 = vadd.xlane.f32.xlu0 %v63_v17 }
 0x143   :  { %v49_v18 = vpop.xlane.xlu1 %48 }
 0x144   :  { %114 = vlog2.f32 %v49_v18 }
 0x147   :  { %v61_v19 = vpop.xlane.xlu1 %60 }
 0x148   :  { %116 = vrcp.f32 %v61_v19 }
 0x149   :  { %v65_v23 = vpop.xlane.xlu0 %64 }
 0x151   :  { %v115_v20 = vpop.eup %114 }
 0x152   :  { %v51_v21 = vmul.f32 0.6931472, %v115_v20 }
 0x154   :  { %v52_v25 = vadd.f32 %v51_v21, %v43_v6 }
 0x155   :  { %v117_v22 = vpop.eup %116 }
 0x156   :  { %v67_v24 = vmul.f32 %v117_v22, %v65_v23 }
 0x158   :  { %v68_v26 = vsub.f32 %v52_v25, %v67_v24 }
 0x15a   :  { %v77_v27 = vsel %vm76_vm1, %v68_v26, 0.0 }
 0x15b   :  { %78 = vadd.xlane.f32.xlu1 %v77_v27 }
 0x1e4   :  { %v79_v28 = vpop.xlane.xlu1 %78 }
 0x1e5   :  { %v80_v29 = vrot.slane %v79_v28, 4 }
 0x1e7   :  { %v81_v30 = vadd.f32 %v80_v29, %v79_v28 }
 0x1e9   :  { %v82_v31 = vrot.slane %v81_v30, 2 }
 0x1eb   :  { %v83_v32 = vadd.f32 %v82_v31, %v81_v30 }
 0x1ed   :  { %v84_v33 = vrot.slane %v83_v32, 1 }
 0x1ef   :  { %v85_v34 = vadd.f32 %v84_v33, %v83_v32 }
 0x1f1   :  { %105 = vpush %v85_v34 }
 0x222   :  { %s106_s19 = spop %105 }
 0x223   :  { %v87_v35 = vstv %s106_s19 }
 0x224   :  { %88 = vst [vmem:[#allocation7] sm:$0xff] %v87_v35 }
 0x225   :  { %169 = shalt.err (!%p166_p0)
}
 0x226   :  { %98 = dma.vmem_to_hbm [thread:$0]  %s96_s1, 128, %s218_s2, [#allocation4]  }
 0x227   :  { %182 = dma.done.wait [#allocation4], 128  }
 0x228   :  { %183 = vsyncadd [#allocation4], 4294967168 }
 0x229   :  { %102 = vsyncpa [#allocation3], 1 }
 0x22a   :  { %103 = vsyncpa [#allocation6], 1 }
 0x22b   :  { %104 = vsyncpa [#allocation4], 1 }

</bundles_post_ra>
